<compile_context>
chip_gen: v6e
topology: v6e:2x2x1
jax: 0.10.0
libtpu: 0.0.40
codegen_flags: <defaults>
</compile_context>

<pallas_src>
from functools import partial

import numpy as np

import jax
import jax.numpy as jnp
from jax import lax
from jax.experimental import pallas as pl
from jax.experimental.pallas import tpu as pltpu


# ----------------------------------------------------------------------------------
# gate_factory mirror.  The PyTorch module always calls gate_factory with the default
# h=0 (a Python scalar), so sigmoid(h) == 0.5 in gate types 4-6.  gate_type is a
# compile-time Python int -> static branch.
# ----------------------------------------------------------------------------------
def _apply_gate(x, gate_type, gate_factor, gate_bias, h=0.0):
    if gate_type == 0:
        return jax.nn.sigmoid(x + h)
    if gate_type == 1:
        return jax.nn.sigmoid(x + h) * gate_factor
    if gate_type == 2:
        return jax.nn.sigmoid(x + h) * gate_factor + gate_bias
    if gate_type == 3:
        return jax.nn.sigmoid(x + h) * 4.0 - 2.0
    if gate_type == 4:
        return (jax.nn.sigmoid(x) + jax.nn.sigmoid(h)) / 2.0
    if gate_type == 5:
        return jax.nn.sigmoid(x) + jax.nn.sigmoid(h)
    if gate_type == 6:
        return jax.nn.sigmoid(x) * jax.nn.sigmoid(h)
    return jax.nn.sigmoid(x + h)


# ----------------------------------------------------------------------------------
# Fused whole-tree kernel (single grid step, in-kernel fori_loop over nodes).
#
# State table rows (resident output buffer, shape (S, 2H), each row = [h | c]):
#   row 0          : zero state           (tree.zero_state / init_state())
#   row 1          : caller-provided prev state (forward()'s prev_h / prev_c)
#   row 2          : saved link_words state from a previous forward()
#   rows 3..3+N-1  : per-node states, in processing (evaluation) order
#
# Per node k the SMEM prefetch arrays give:
#   base_row[k] : row of the precomputed base table (0 = internal-node biases,
#                 1+j = leaf j's hoisted embedding projection incl. all biases)
#   x_src[k]    : state-table row whose hidden is the "x" input (zero row for leaves)
#   prev_src[k] : state-table row providing (prev_h, prev_c)
# ----------------------------------------------------------------------------------
def _tree_lstm_kernel(num_ref, base_row_ref, x_src_ref, prev_src_ref,   # SMEM prefetch
                      init_ref, base_ref, wx_ref, wp_ref,               # resident VMEM in
                      state_ref,                                        # resident VMEM out
                      *, hidden_size, gate_type, gate_factor, gate_bias):
    H = hidden_size

    # One aligned 8-row store: rows 0..2 are the special states, rows 3..7 are zeros
    # and will be overwritten by nodes 0..4 before anything reads them.
    state_ref[0:8, :] = init_ref[...]

    wx = wx_ref[...]        # (H, 4H) bf16, loop-invariant (stays in vregs/VMEM)
    wp = wp_ref[...]        # (H, 4H) bf16

    def body(k, carry):
        br = base_row_ref[k]
        xs = x_src_ref[k]
        ps = prev_src_ref[k]

        base = base_ref[pl.ds(br, 1), :]            # (1, 4H) f32, biases pre-summed
        x_row = state_ref[pl.ds(xs, 1), :]          # (1, 2H) = [x_h | x_c]
        p_row = state_ref[pl.ds(ps, 1), :]          # (1, 2H) = [p_h | p_c]
        x_h = x_row[:, :H].astype(wx.dtype)
        p_h = p_row[:, :H].astype(wp.dtype)
        p_c = p_row[:, H:]

        # Two accumulating 1-row MXU dots (no lane concat on the serial chain).
        hx = (base
              + jnp.dot(x_h, wx, preferred_element_type=jnp.float32)
              + jnp.dot(p_h, wp, preferred_element_type=jnp.float32))   # (1, 4H) f32

        s = _apply_gate(hx[:, :3 * H], gate_type, gate_factor, gate_bias)
        i = s[:, 0 * H:1 * H]
        o = s[:, 1 * H:2 * H]
        f = s[:, 2 * H:3 * H]
        u = jnp.tanh(hx[:, 3 * H:])

        cell = i * u + f * p_c
        hidden = o * jnp.tanh(cell)

        state_ref[pl.ds(k + 3, 1), :] = jnp.concatenate([hidden, cell], axis=1)
        return carry

    lax.fori_loop(0, num_ref[0], body, 0)


@partial(jax.jit,
         static_argnames=("hidden_size", "gate_type", "gate_factor", "gate_bias"))
def _tree_lstm_forward(num_nodes, base_row, x_src, prev_src, init_rows, base_tab,
                       w_x, w_p, *, hidden_size, gate_type, gate_factor, gate_bias):
    H = hidden_size
    n_pad = base_row.shape[0]
    S = n_pad + 8                       # rows 0..7 init block + up to n_pad node rows

    kernel = partial(_tree_lstm_kernel, hidden_size=H, gate_type=int(gate_type),
                     gate_factor=float(gate_factor), gate_bias=float(gate_bias))

    def resident(shape):
        # Full-array block + constant index_map -> DMA'd once, resident in VMEM for
        # the single grid step.
        return pl.BlockSpec(shape, lambda i, *_: (0,) * len(shape))

    return pl.pallas_call(
        kernel,
        grid_spec=pltpu.PrefetchScalarGridSpec(
            num_scalar_prefetch=4,
            grid=(1,),
            in_specs=[resident(init_rows.shape), resident(base_tab.shape),
                      resident(w_x.shape), resident(w_p.shape)],
            out_specs=resident((S, 2 * H)),
        ),
        out_shape=jax.ShapeDtypeStruct((S, 2 * H), jnp.float32),
        compiler_params=pltpu.CompilerParams(dimension_semantics=("arbitrary",)),
    )(num_nodes, base_row, x_src, prev_src, init_rows, base_tab, w_x, w_p)


# ----------------------------------------------------------------------------------
# Host-side tree handling.
# ----------------------------------------------------------------------------------
class Tree:
    def __init__(self, word=None, children=()):
        self.word = word
        self.children = list(children)
        self.state = None
        self.zero_state = None

    def getType(self):
        return len(self.children) != 0


_ZERO_ROW, _CALLER_ROW, _LINK_ROW, _NODE_ROW_OFF = 0, 1, 2, 3


def _linearize_tree(tree, start_ele, link_words, has_saved_link):
    """Symbolically replays the PyTorch recursion and records, per evaluated node,
    which base-table row / state-table rows its cell update reads."""
    base_rows, x_srcs, prev_srcs, leaf_words = [], [], [], []
    link = {"last_child_row": _LINK_ROW if (link_words and has_saved_link) else None,
            "last_leaf_idx": None}

    def visit(node, start, prev_row):
        assert len(node.children) != 0 or node.word is not None
        assert not (len(node.children) != 0 and node.word is not None)
        if link_words and start and (link["last_child_row"] is not None):
            prev_row = link["last_child_row"]
        if len(node.children) != 0:
            visit(node.children[0], True, _ZERO_ROW)
            for idx in range(1, len(node.children)):
                visit(node.children[idx], False,
                      node.children[idx - 1]._proc_idx + _NODE_ROW_OFF)
            x_row = node.children[-1]._proc_idx + _NODE_ROW_OFF
            base_row = 0                      # internal node: biases-only base row
        else:
            leaf_words.append(node.word)
            base_row = len(leaf_words)        # 1-based row into the base table
            x_row = _ZERO_ROW
        my_idx = len(base_rows)
        base_rows.append(base_row)
        x_srcs.append(x_row)
        prev_srcs.append(prev_row)
        node._proc_idx = my_idx
        if link_words and len(node.children) == 0:
            link["last_child_row"] = my_idx + _NODE_ROW_OFF
            link["last_leaf_idx"] = my_idx

    visit(tree, start_ele, _CALLER_ROW)
    return base_rows, x_srcs, prev_srcs, leaf_words, link["last_leaf_idx"]


class ImprovedTreeNodePallas:
    def __init__(self, input_size, hidden_size, output_size, vocab_size,
                 word_scale=0.05, link_words=False, gate_type=0,
                 gate_factor=1.0, gate_bias=0.0, key=None):
        self.input_size = input_size
        self.hidden_size = hidden_size
        self.output_size = output_size
        self.vocab_size = vocab_size
        self.link_words = link_words
        self.last_child_state = None
        self.gate_type = gate_type
        self.gate_factor = gate_factor
        self.gate_bias = gate_bias

        key = jax.random.PRNGKey(0) if key is None else key
        ks = jax.random.split(key, 7)

        # nn.Embedding(vocab_size, input_size), uniform(-word_scale, word_scale)
        self.embeds = jax.random.uniform(
            ks[0], (vocab_size, input_size), jnp.float32,
            minval=-word_scale, maxval=word_scale)

        def linear_init(kw, kb, fan_in, fan_out):
            # nn.Linear default: U(-1/sqrt(fan_in), 1/sqrt(fan_in)); W stored (in,out).
            bound = 1.0 / (fan_in ** 0.5)
            W = jax.random.uniform(kw, (fan_in, fan_out), jnp.float32,
                                   minval=-bound, maxval=bound)
            b = jax.random.uniform(kb, (fan_out,), jnp.float32,
                                   minval=-bound, maxval=bound)
            return W, b

        H4 = 4 * hidden_size
        self.Wx_inputx, self.b_inputx = linear_init(ks[1], ks[2], input_size, H4)
        self.Wx_inputh, self.b_inputh = linear_init(ks[3], ks[4], hidden_size, H4)
        self.Wx_prevh, self.b_prevh = linear_init(ks[5], ks[6], hidden_size, H4)

        # Static weight selection, mirroring the `hidden_size == input_size` branch.
        if hidden_size == input_size:
            w_int, b_int = self.Wx_inputx, self.b_inputx
        else:
            w_int, b_int = self.Wx_inputh, self.b_inputh
        # bf16 MXU-input copies (kernel accumulates in f32).
        self._w_x_bf16 = jnp.asarray(w_int, jnp.bfloat16)
        self._w_p_bf16 = jnp.asarray(self.Wx_prevh, jnp.bfloat16)
        # Host-side (numpy) copies for the hoisted leaf projection / pre-summed biases.
        self._int_bias = np.asarray(b_int + self.b_prevh, np.float32)
        self._leaf_bias = np.asarray(self.b_inputx + self.b_prevh, np.float32)
        self._embeds_np = np.asarray(self.embeds, np.float32)
        self._wx_inputx_np = np.asarray(self.Wx_inputx, np.float32)

    def init_state(self):
        z = jnp.zeros((1, self.hidden_size), jnp.float32)
        return (z, z)

    def reset(self):
        self.last_child_state = None

    def toggle_words_link(self, state=False):
        self.link_words = state
        self.reset()

    def _assign_states(self, tree, h_np, c_np):
        row = tree._proc_idx + _NODE_ROW_OFF
        tree.state = (h_np[row:row + 1].copy(), c_np[row:row + 1].copy())
        if len(tree.children) != 0:
            tree.zero_state = self.init_state()
            for ch in tree.children:
                self._assign_states(ch, h_np, c_np)

    def forward(self, tree, start_ele, prev_h, prev_c):
        has_link = self.last_child_state is not None
        br, xs, ps, leaf_words, last_leaf = _linearize_tree(
            tree, start_ele, self.link_words, has_link)
        N, H = len(br), self.hidden_size
        L = len(leaf_words)

        # Bucket shapes (powers of two) so distinct tree shapes reuse one compile.
        n_pad = max(8, pl.next_power_of_2(N))
        base_rows_pad = max(8, pl.next_power_of_2(1 + L))

        def pad_i32(vals, size):
            a = np.zeros((size,), np.int32)
            a[:len(vals)] = np.asarray(vals, np.int32)
            return a

        num_nodes = np.asarray([N], np.int32)
        base_row = pad_i32(br, n_pad)
        x_src = pad_i32(xs, n_pad)
        prev_src = pad_i32(ps, n_pad)

        # Hoisted leaf projection (one batched host matmul) + pre-summed biases.
        base_tab = np.zeros((base_rows_pad, 4 * H), np.float32)
        base_tab[0, :] = self._int_bias
        if L:
            ids = np.asarray(leaf_words, np.int64)
            base_tab[1:1 + L, :] = (self._embeds_np[ids] @ self._wx_inputx_np
                                    + self._leaf_bias)

        # Special rows 0..2 = [zero | caller prev | saved link], each row = [h | c].
        init_rows = np.zeros((8, 2 * H), np.float32)
        init_rows[1, :H] = np.asarray(prev_h, np.float32).reshape(-1)
        init_rows[1, H:] = np.asarray(prev_c, np.float32).reshape(-1)
        if has_link:
            lh, lc = self.last_child_state
            init_rows[2, :H] = np.asarray(lh, np.float32).reshape(-1)
            init_rows[2, H:] = np.asarray(lc, np.float32).reshape(-1)

        state_tab = _tree_lstm_forward(
            num_nodes, base_row, x_src, prev_src, init_rows, base_tab,
            self._w_x_bf16, self._w_p_bf16,
            hidden_size=H, gate_type=int(self.gate_type),
            gate_factor=float(self.gate_factor), gate_bias=float(self.gate_bias))

        # ONE device->host transfer; per-node slicing happens in numpy.
        states = np.asarray(jax.device_get(state_tab))
        h_np, c_np = states[:, :H], states[:, H:]
        self._assign_states(tree, h_np, c_np)
        if self.link_words and last_leaf is not None:
            row = last_leaf + _NODE_ROW_OFF
            self.last_child_state = (h_np[row:row + 1].copy(),
                                     c_np[row:row + 1].copy())
        return tree.state


# ----------------------------------------------------------------------------------
# Pure-JAX (f32) transcription of the PyTorch recursion (correctness check only).
# ----------------------------------------------------------------------------------
class _PureJaxReference:
    def __init__(self, m):
        self.m = m
        self.last_child_state = None

    def init_state(self):
        z = jnp.zeros((1, self.m.hidden_size), jnp.float32)
        return (z, z)

    def forward(self, tree, start_ele, prev_h, prev_c):
        m = self.m
        prev_h = jnp.asarray(prev_h, jnp.float32)
        prev_c = jnp.asarray(prev_c, jnp.float32)
        if m.link_words and start_ele and (self.last_child_state is not None):
            prev_h, prev_c = self.last_child_state
        if len(tree.children) != 0:
            zs = self.init_state()
            self.forward(tree.children[0], True, *zs)
            for idx in range(1, len(tree.children)):
                self.forward(tree.children[idx], False, *tree.children[idx - 1].state)
            prev_ch, _ = tree.children[-1].state
            if m.hidden_size == m.input_size:
                hx = (prev_ch @ m.Wx_inputx + m.b_inputx
                      + prev_h @ m.Wx_prevh + m.b_prevh)
            else:
                hx = (prev_ch @ m.Wx_inputh + m.b_inputh
                      + prev_h @ m.Wx_prevh + m.b_prevh)
        else:
            x = m.embeds[tree.word][None, :]
            hx = x @ m.Wx_inputx + m.b_inputx + prev_h @ m.Wx_prevh + m.b_prevh
        H = m.hidden_size
        i = _apply_gate(hx[:, 0:H], m.gate_type, m.gate_factor, m.gate_bias)
        o = _apply_gate(hx[:, H:2 * H], m.gate_type, m.gate_factor, m.gate_bias)
        f = _apply_gate(hx[:, 2 * H:3 * H], m.gate_type, m.gate_factor, m.gate_bias)
        u = jnp.tanh(hx[:, 3 * H:4 * H])
        cell = i * u + f * prev_c
        hidden = o * jnp.tanh(cell)
        tree.state = (hidden, cell)
        if m.link_words and len(tree.children) == 0:
            self.last_child_state = tree.state
        return tree.state


# ----------------------------------------------------------------------------------
# demo / self-check
# ----------------------------------------------------------------------------------
if __name__ == "__main__":
    input_size, hidden_size, output_size, vocab_size = 16, 32, 8, 50
    # bf16 MXU inputs in the kernel vs f32 reference -> loose tolerance.
    TOL = 5e-2

    def make_tree():
        # 10 nodes: 7 leaves, 3 internal (nested).
        return Tree(children=[
            Tree(word=3),
            Tree(word=7),
            Tree(children=[Tree(word=11), Tree(word=20),
                           Tree(children=[Tree(word=1), Tree(word=42)])]),
            Tree(word=5),
        ])

    # ---- model 1: hidden != input, default sigmoid gate, no word links ----------
    node = ImprovedTreeNodePallas(input_size, hidden_size, output_size, vocab_size,
                                  word_scale=0.05, link_words=False, gate_type=0,
                                  gate_factor=1.0, gate_bias=0.0,
                                  key=jax.random.PRNGKey(0))
    kh, kc = jax.random.split(jax.random.PRNGKey(1))
    prev_h = 0.1 * jax.random.normal(kh, (1, hidden_size), jnp.float32)
    prev_c = 0.1 * jax.random.normal(kc, (1, hidden_size), jnp.float32)

    tree = make_tree()
    hidden, cell = node.forward(tree, True, prev_h, prev_c)
    jax.block_until_ready((hidden, cell))
    assert hidden.shape == (1, hidden_size) and cell.shape == (1, hidden_size)
    assert bool(jnp.all(jnp.isfinite(hidden))) and bool(jnp.all(jnp.isfinite(cell)))

    ref = _PureJaxReference(node)
    rh, rc = ref.forward(make_tree(), True, prev_h, prev_c)
    assert bool(jnp.allclose(hidden, rh, rtol=TOL, atol=TOL))
    assert bool(jnp.allclose(cell, rc, rtol=TOL, atol=TOL))

    # ---- model 2: hidden == input, link_words on, scaled/biased gate -------------
    node2 = ImprovedTreeNodePallas(32, 32, output_size, vocab_size,
                                   word_scale=0.05, link_words=True, gate_type=2,
                                   gate_factor=1.5, gate_bias=-0.25,
                                   key=jax.random.PRNGKey(2))
    ref2 = _PureJaxReference(node2)
    z = jnp.zeros((1, 32), jnp.float32)

    h2a, c2a = node2.forward(make_tree(), True, z, z)          # fills last_child_state
    r2a_h, r2a_c = ref2.forward(make_tree(), True, z, z)
    assert bool(jnp.allclose(h2a, r2a_h, rtol=TOL, atol=TOL))
    assert bool(jnp.allclose(c2a, r2a_c, rtol=TOL, atol=TOL))

    h2b, c2b = node2.forward(make_tree(), True, z, z)          # uses saved link state
    r2b_h, r2b_c = ref2.forward(make_tree(), True, z, z)
    jax.block_until_ready((h2b, c2b))
    assert bool(jnp.allclose(h2b, r2b_h, rtol=TOL, atol=TOL))
    assert bool(jnp.allclose(c2b, r2b_c, rtol=TOL, atol=TOL))

    print("KERNEL_OK")
</pallas_src>

<mosaic_0001>
module attributes {stable_mosaic.version = 11 : i64} {
  func.func @_tree_lstm_kernel(%arg0: i32, %arg1: memref<1xi32, #tpu.memory_space<smem>>, %arg2: memref<16xi32, #tpu.memory_space<smem>>, %arg3: memref<16xi32, #tpu.memory_space<smem>>, %arg4: memref<16xi32, #tpu.memory_space<smem>>, %arg5: memref<8x64xf32, #tpu.memory_space<vmem>>, %arg6: memref<8x128xf32, #tpu.memory_space<vmem>>, %arg7: memref<32x128xbf16, #tpu.memory_space<vmem>>, %arg8: memref<32x128xbf16, #tpu.memory_space<vmem>>, %arg9: memref<24x64xf32, #tpu.memory_space<vmem>>) attributes {dimension_semantics = [#tpu.dimension_semantics<arbitrary>], iteration_bounds = array<i64: 1>, scalar_prefetch = 4 : i64, scratch_operands = 0 : i64, tpu.core_type = #tpu.core_type<tc>, window_params = [{pipeline_mode = #tpu.pipeline_mode<synchronous>, transform_indices = @transform_0, window_bounds = array<i64: 8, 64>}, {pipeline_mode = #tpu.pipeline_mode<synchronous>, transform_indices = @transform_1, window_bounds = array<i64: 8, 128>}, {pipeline_mode = #tpu.pipeline_mode<synchronous>, transform_indices = @transform_2, window_bounds = array<i64: 32, 128>}, {pipeline_mode = #tpu.pipeline_mode<synchronous>, transform_indices = @transform_3, window_bounds = array<i64: 32, 128>}, {pipeline_mode = #tpu.pipeline_mode<synchronous>, transform_indices = @transform_4, window_bounds = array<i64: 24, 64>}]} {
    %c0 = arith.constant 0 : index
    %c0_0 = arith.constant 0 : index
    %0 = vector.load %arg5[%c0, %c0_0] : memref<8x64xf32, #tpu.memory_space<vmem>>, vector<8x64xf32>
    %c0_1 = arith.constant 0 : index
    %c0_2 = arith.constant 0 : index
    %1 = vector.load %arg9[%c0_1, %c0_2] : memref<24x64xf32, #tpu.memory_space<vmem>>, vector<8x64xf32>
    tpu.vector_store %arg9[%c0_1, %c0_2], %0 {strides = array<i32>} : memref<24x64xf32, #tpu.memory_space<vmem>>, vector<8x64xf32>,
    %c0_3 = arith.constant 0 : index
    %c0_4 = arith.constant 0 : index
    %2 = vector.load %arg7[%c0_3, %c0_4] : memref<32x128xbf16, #tpu.memory_space<vmem>>, vector<32x128xbf16>
    %c0_5 = arith.constant 0 : index
    %c0_6 = arith.constant 0 : index
    %3 = vector.load %arg8[%c0_5, %c0_6] : memref<32x128xbf16, #tpu.memory_space<vmem>>, vector<32x128xbf16>
    %c0_7 = arith.constant 0 : index
    %4 = memref.load %arg1[%c0_7] : memref<1xi32, #tpu.memory_space<smem>>
    %c0_i32 = arith.constant 0 : i32
    %c0_i32_8 = arith.constant 0 : i32
    %5 = arith.subi %4, %c0_i32_8 : i32
    %6 = arith.addi %c0_i32_8, %5 : i32
    %c1_i32 = arith.constant 1 : i32
    scf.for %arg10 = %c0_i32_8 to %6 step %c1_i32  : i32 {
      %7 = arith.index_cast %arg10 : i32 to index
      %8 = memref.load %arg2[%7] : memref<16xi32, #tpu.memory_space<smem>>
      %9 = arith.index_cast %arg10 : i32 to index
      %10 = memref.load %arg3[%9] : memref<16xi32, #tpu.memory_space<smem>>
      %11 = arith.index_cast %arg10 : i32 to index
      %12 = memref.load %arg4[%11] : memref<16xi32, #tpu.memory_space<smem>>
      %13 = arith.index_cast %8 : i32 to index
      %c0_9 = arith.constant 0 : index
      %14 = vector.load %arg6[%13, %c0_9] : memref<8x128xf32, #tpu.memory_space<vmem>>, vector<1x128xf32>
      %15 = arith.index_cast %10 : i32 to index
      %c0_10 = arith.constant 0 : index
      %16 = vector.load %arg9[%15, %c0_10] : memref<24x64xf32, #tpu.memory_space<vmem>>, vector<1x64xf32>
      %17 = arith.index_cast %12 : i32 to index
      %c0_11 = arith.constant 0 : index
      %18 = vector.load %arg9[%17, %c0_11] : memref<24x64xf32, #tpu.memory_space<vmem>>, vector<1x64xf32>
      %19 = vector.extract_strided_slice %16 {offsets = [0, 0], sizes = [1, 32], strides = [1, 1]} : vector<1x64xf32> to vector<1x32xf32>
      %20 = arith.truncf %19 : vector<1x32xf32> to vector<1x32xbf16>
      %21 = vector.extract_strided_slice %18 {offsets = [0, 0], sizes = [1, 32], strides = [1, 1]} : vector<1x64xf32> to vector<1x32xf32>
      %22 = arith.truncf %21 : vector<1x32xf32> to vector<1x32xbf16>
      %23 = vector.extract_strided_slice %18 {offsets = [0, 32], sizes = [1, 32], strides = [1, 1]} : vector<1x64xf32> to vector<1x32xf32>
      %cst = arith.constant dense<0.000000e+00> : vector<1x128xf32>
      %24 = tpu.matmul %20, %2, %cst {dimension_numbers = #tpu.dot_dimension_numbers<[1], [0], [0], [1], [0, 0, 1, 1], [], []>} : vector<1x32xbf16>, vector<32x128xbf16>, vector<1x128xf32> -> vector<1x128xf32>
      %25 = arith.addf %14, %24 : vector<1x128xf32>
      %cst_12 = arith.constant dense<0.000000e+00> : vector<1x128xf32>
      %26 = tpu.matmul %22, %3, %cst_12 {dimension_numbers = #tpu.dot_dimension_numbers<[1], [0], [0], [1], [0, 0, 1, 1], [], []>} : vector<1x32xbf16>, vector<32x128xbf16>, vector<1x128xf32> -> vector<1x128xf32>
      %27 = arith.addf %25, %26 : vector<1x128xf32>
      %28 = vector.extract_strided_slice %27 {offsets = [0, 0], sizes = [1, 96], strides = [1, 1]} : vector<1x128xf32> to vector<1x96xf32>
      %cst_13 = arith.constant 0.000000e+00 : f32
      %29 = vector.broadcast %cst_13 : f32 to vector<1x96xf32>
      %30 = arith.addf %28, %29 : vector<1x96xf32>
      %31 = arith.negf %30 : vector<1x96xf32>
      %32 = math.exp %31 : vector<1x96xf32>
      %cst_14 = arith.constant 1.000000e+00 : f32
      %33 = vector.broadcast %cst_14 : f32 to vector<1x96xf32>
      %34 = arith.addf %33, %32 : vector<1x96xf32>
      %35 = arith.divf %33, %34 : vector<1x96xf32>
      %36 = vector.extract_strided_slice %35 {offsets = [0, 0], sizes = [1, 32], strides = [1, 1]} : vector<1x96xf32> to vector<1x32xf32>
      %37 = vector.extract_strided_slice %35 {offsets = [0, 32], sizes = [1, 32], strides = [1, 1]} : vector<1x96xf32> to vector<1x32xf32>
      %38 = vector.extract_strided_slice %35 {offsets = [0, 64], sizes = [1, 32], strides = [1, 1]} : vector<1x96xf32> to vector<1x32xf32>
      %39 = vector.extract_strided_slice %27 {offsets = [0, 96], sizes = [1, 32], strides = [1, 1]} : vector<1x128xf32> to vector<1x32xf32>
      %40 = math.tanh %39 : vector<1x32xf32>
      %41 = arith.mulf %36, %40 : vector<1x32xf32>
      %42 = arith.mulf %38, %23 : vector<1x32xf32>
      %43 = arith.addf %41, %42 : vector<1x32xf32>
      %44 = math.tanh %43 : vector<1x32xf32>
      %45 = arith.mulf %37, %44 : vector<1x32xf32>
      %46 = tpu.concatenate %45, %43 in 1 : vector<1x32xf32>, vector<1x32xf32> -> vector<1x64xf32>
      %c3_i32 = arith.constant 3 : i32
      %47 = arith.addi %arg10, %c3_i32 : i32
      %48 = arith.index_cast %47 : i32 to index
      %c0_15 = arith.constant 0 : index
      %49 = vector.load %arg9[%48, %c0_15] : memref<24x64xf32, #tpu.memory_space<vmem>>, vector<1x64xf32>
      tpu.vector_store %arg9[%48, %c0_15], %46 {strides = array<i32>} : memref<24x64xf32, #tpu.memory_space<vmem>>, vector<1x64xf32>,
    }
    return
  }
  func.func @transform_0(%arg0: i32, %arg1: memref<1xi32, #tpu.memory_space<smem>>, %arg2: memref<16xi32, #tpu.memory_space<smem>>, %arg3: memref<16xi32, #tpu.memory_space<smem>>, %arg4: memref<16xi32, #tpu.memory_space<smem>>) -> (i32, i32) {
    %c0_i32 = arith.constant 0 : i32
    %c0_i32_0 = arith.constant 0 : i32
    %c0_i32_1 = arith.constant 0 : i32
    return %c0_i32, %c0_i32_0 : i32, i32
  }
  func.func @transform_1(%arg0: i32, %arg1: memref<1xi32, #tpu.memory_space<smem>>, %arg2: memref<16xi32, #tpu.memory_space<smem>>, %arg3: memref<16xi32, #tpu.memory_space<smem>>, %arg4: memref<16xi32, #tpu.memory_space<smem>>) -> (i32, i32) {
    %c0_i32 = arith.constant 0 : i32
    %c0_i32_0 = arith.constant 0 : i32
    %c0_i32_1 = arith.constant 0 : i32
    return %c0_i32, %c0_i32_0 : i32, i32
  }
  func.func @transform_2(%arg0: i32, %arg1: memref<1xi32, #tpu.memory_space<smem>>, %arg2: memref<16xi32, #tpu.memory_space<smem>>, %arg3: memref<16xi32, #tpu.memory_space<smem>>, %arg4: memref<16xi32, #tpu.memory_space<smem>>) -> (i32, i32) {
    %c0_i32 = arith.constant 0 : i32
    %c0_i32_0 = arith.constant 0 : i32
    %c0_i32_1 = arith.constant 0 : i32
    return %c0_i32, %c0_i32_0 : i32, i32
  }
  func.func @transform_3(%arg0: i32, %arg1: memref<1xi32, #tpu.memory_space<smem>>, %arg2: memref<16xi32, #tpu.memory_space<smem>>, %arg3: memref<16xi32, #tpu.memory_space<smem>>, %arg4: memref<16xi32, #tpu.memory_space<smem>>) -> (i32, i32) {
    %c0_i32 = arith.constant 0 : i32
    %c0_i32_0 = arith.constant 0 : i32
    %c0_i32_1 = arith.constant 0 : i32
    return %c0_i32, %c0_i32_0 : i32, i32
  }
  func.func @transform_4(%arg0: i32, %arg1: memref<1xi32, #tpu.memory_space<smem>>, %arg2: memref<16xi32, #tpu.memory_space<smem>>, %arg3: memref<16xi32, #tpu.memory_space<smem>>, %arg4: memref<16xi32, #tpu.memory_space<smem>>) -> (i32, i32) {
    %c0_i32 = arith.constant 0 : i32
    %c0_i32_0 = arith.constant 0 : i32
    %c0_i32_1 = arith.constant 0 : i32
    return %c0_i32, %c0_i32_0 : i32, i32
  }
}

</mosaic_0001>

<bundles_post_ra>
// kernel: _tree_lstm_forward.1
= control target key start
LH: loop header
LB: loop body
LE: loop exit
PB: predicated region body
PF: predicated region fallthrough
CT: control target
= control target key end

     0   :  { %s606_s0 = inlined_call_operand.<no memory space> [shape: s32[1], index: 0, kind: input, shape index: {}]   ;;  %s607_s1 = inlined_call_operand.vmem [shape: s32[16], index: 1, kind: input, shape index: {}]   ;;  %s608_s4 = inlined_call_operand.hbm [shape: f32[8,64], index: 4, kind: input, shape index: {}]   ;;  %s609_s5 = inlined_call_operand.vmem [shape: f32[8,128], index: 5, kind: input, shape index: {}]   ;;  %s610_s6 = inlined_call_operand.hbm [shape: bf16[32,128], index: 6, kind: input, shape index: {}]   ;;  %s611_s7 = inlined_call_operand.hbm [shape: bf16[32,128], index: 7, kind: input, shape index: {}]   ;;  %s612_s8 = inlined_call_operand.hbm [shape: f32[24,64], index: 8, kind: output, shape index: {}]   ;;  %s613_s2 = inlined_call_operand.hbm [shape: s32[16], index: 2, kind: input, shape index: {}]   ;;  %s614_s3 = inlined_call_operand.hbm [shape: s32[16], index: 3, kind: input, shape index: {}]  }
   0x1   :  { %s14_s29 = sshll.u32 %s607_s1, 4  ;;  %s15_s29 = int_to_ptr.vmem [resolvable:$true] %s14_s29 }
   0x2   :  { %s348_s30 = scalar_lea.vmem %s15_s29, 16  ;;  %p353_p1 = scmp.lt.s32.totalorder %s15_s29, %s15_s29 }
   0x3   :  { %p349_p0 = scmp.ne.s32.totalorder %s15_s29, %s348_s30  ;;  %p354_p2 = scmp.lt.s32.totalorder %s348_s30, %s348_s30 }
   0x5   :  { %p355_p3 = por %p354_p2, %p353_p1 }
   0x7   :  { %p356_p4 = pnand %p355_p3, %p349_p0 }
   0x9   :  { %359 = shalt.err (!%p356_p4)  }
   0xa   :  { %s472_s9 = smov [#allocation4]   ;;  %s473_s10 = smov [#allocation5]  }
   0xb   :  { %17 = dma.vmem_to_smem %s15_s29, 16, %s472_s9, [#allocation2] }
   0xc   :  { %19 = dma.hbm_to_smem %s613_s2, 16, %s473_s10, [#allocation2] }
   0xd   :  { %s474_s13 = smov [#allocation6]  }
   0xe   :  { %21 = dma.hbm_to_smem %s614_s3, 16, %s474_s13, [#allocation2] }
   0xf   :  { %460 = dma.done.wait [#allocation2], 48 }
  0x10   :  { %461 = vsyncadd [#allocation2], 4294967248 }
  0x11   :  { %23 = sfence }
  0x12   :  { %24 = vsyncpa [#allocation8], 0 }
  0x13   :  { %25 = vsyncpa [#allocation11], 0 }
  0x14   :  { %26 = vsyncpa [#allocation9], 0  ;;  %s475_s1 = smov [#allocation10]  }
  0x15   :  { %s44_s16 = sshll.u32 %s475_s1, 4  ;;  %s45_s16 = int_to_ptr.vmem [resolvable:$true] %s44_s16 }
  0x16   :  { %s384_s17 = scalar_lea.vmem %s45_s16, 256  ;;  %p389_p6 = scmp.lt.s32.totalorder %s45_s16, %s45_s16 }
  0x17   :  { %p385_p5 = scmp.ne.s32.totalorder %s45_s16, %s384_s17  ;;  %p390_p7 = scmp.lt.s32.totalorder %s384_s17, %s384_s17 }
  0x19   :  { %p391_p8 = por %p390_p7, %p389_p6 }
  0x1b   :  { %p392_p9 = pnand %p391_p8, %p385_p5 }
  0x1d   :  { %395 = shalt.err (!%p392_p9)
}
  0x1e   :  { %s476_s2 = smov 64   ;;  %s477_s18 = smov 4  }
  0x1f   :  { %50 = dma.hbm_to_vmem [thread:$0]  %s610_s6, 256, %s45_s16, [#allocation11], %s476_s2, %s476_s2, %s477_s18  }
  0x20   :  { %s478_s20 = smov [#allocation7]   ;;  %s479_s22 = smov [#allocation12]  }
  0x21   :  { %s33_s21 = sshll.u32 %s478_s20, 4  ;;  %s56_s23 = sshll.u32 %s479_s22, 4  ;;  %s34_s21 = int_to_ptr.vmem [resolvable:$true] %s33_s21  ;;  %s57_s23 = int_to_ptr.vmem [resolvable:$true] %s56_s23 }
  0x22   :  { %s404_s24 = scalar_lea.vmem %s34_s21, 128  ;;  %p409_p11 = scmp.lt.s32.totalorder %s34_s21, %s34_s21 }
  0x23   :  { %p405_p10 = scmp.ne.s32.totalorder %s34_s21, %s404_s24  ;;  %p410_p12 = scmp.lt.s32.totalorder %s404_s24, %s404_s24 }
  0x25   :  { %p411_p13 = por %p410_p12, %p409_p11 }
  0x27   :  { %p412_p0 = pnand %p411_p13, %p405_p10 }
  0x29   :  { %415 = shalt.err (!%p412_p0)
}
  0x2a   :  { %36 = dma.hbm_to_vmem [thread:$0]  %s608_s4, 128, %s34_s21, [#allocation8]  }
  0x2b   :  { %s424_s27 = scalar_lea.vmem %s57_s23, 256  ;;  %p429_p2 = scmp.lt.s32.totalorder %s57_s23, %s57_s23 }
  0x2c   :  { %p425_p1 = scmp.ne.s32.totalorder %s57_s23, %s424_s27  ;;  %p430_p3 = scmp.lt.s32.totalorder %s424_s27, %s424_s27 }
  0x2e   :  { %p431_p4 = por %p430_p3, %p429_p2 }
  0x30   :  { %p432_p5 = pnand %p431_p4, %p425_p1 }
  0x32   :  { %435 = shalt.err (!%p432_p5)
}
  0x33   :  { %62 = dma.hbm_to_vmem [thread:$0]  %s611_s7, 256, %s57_s23, [#allocation11], %s476_s2, %s476_s2, %s477_s18  }
  0x34   :  { %462 = dma.done.wait [#allocation8], 128  }
  0x35   :  { %463 = vsyncadd [#allocation8], 4294967168 }
  0x36   :  { %464 = dma.done.wait [#allocation11], 512  }
  0x37   :  { %465 = vsyncadd [#allocation11], 4294966784  ;;  %vm74_vm0 = vcmask 523264   ;;  %v551_v0 = vld [vmem:[#allocation10] sm:$0xf]  ;;  %v73_v8 = vld [vmem:[#allocation7] sm:$0xff] }
  0x38   :  { %v553_v1 = vld [vmem:[#allocation10 + $0x4] sm:$0xf]  ;;  %v555_v2 = vld [vmem:[#allocation10 + $0x8] sm:$0xf]  ;;  %v557_v3 = vld [vmem:[#allocation10 + $0xc] sm:$0xf] }
  0x39   :  { %v559_v4 = vld [vmem:[#allocation12] sm:$0xf]  ;;  %v561_v5 = vld [vmem:[#allocation12 + $0x4] sm:$0xf]  ;;  %v563_v6 = vld [vmem:[#allocation12 + $0x8] sm:$0xf] }
  0x3a   :  { %v565_v7 = vld [vmem:[#allocation12 + $0xc] sm:$0xf]  ;;  %75 = vst.msk [vmem:[#allocation13] sm:$0xff] %vm74_vm0, %v73_v8  ;;  %p285_p6 = scmp.le.s32.totalorder %s606_s0, 0 }
  0x3b   :  { %s570_s29 = smov (!%p285_p6), 0  }
  0x3c   :  { %282 = sbr.rel (%p285_p6) target bundleno = 671 (0x29f), region = 53 }
  0x41 LB: > { %v287_v9 = vcombine.low %v555_v2, %v557_v3  ;;  %v290_v10 = vcombine.low %v563_v6, %v565_v7  ;;  %v480_v11 = vmov 0.0   ;;  %v286_v12 = vcombine.low %v551_v0, %v553_v1  ;;  %s92_s30 = sld [smem:[#allocation5 + %s470_s29]]  ;;  %s482_s12 = smov 32   ;;  %s470_s29 = sphi %s570_s29, %s88_s29  }
  0x42   : > { %300 = vmatprep.subr.bf16.mxu0 %v480_v11  ;;  %308 = vmatprep.subr.bf16.mxu1 %v480_v11  ;;  %v289_v13 = vcombine.low %v559_v4, %v561_v5  ;;  %s93_s9 = sld [smem:[#allocation6 + %s470_s29]]  ;;  %vm481_vm1 = vmmov 0   ;;  %vm114_vm2 = vcmask 261120   ;;  %s483_s16 = smov 64   ;;  %vm255_vm3 = vcmask 516096  }
  0x43   : > { %301 = vmatpush3.bf16.msra.mxu0 %v287_v9  ;;  %309 = vmatpush3.bf16.msra.mxu1 %v290_v10  ;;  %s91_s13 = sld [smem:[#allocation4 + %s470_s29]]  ;;  %s484_s17 = smov 96  }
  0x44   : > { %302 = vmatprep.subr.bf16.mxu0 %v480_v11  ;;  %310 = vmatprep.subr.bf16.mxu1 %v480_v11  ;;  %s278_s2 = scalar_lea.vmem [#allocation13], %s470_s29  ;;  %s88_s29 = sadd.s32 1, %s470_s29  }
  0x45   : > { %304 = vmatprep.mubr.msk.bf16.mxu0 %vm481_vm1, %v480_v11  ;;  %312 = vmatprep.mubr.msk.bf16.mxu1 %vm481_vm1, %v480_v11  ;;  %p87_p7 = scmp.ge.s32.totalorder %s88_s29, %s606_s0 }
  0x47   : > { %303 = vmatpush3.bf16.msra.mxu0 %v286_v12  ;;  %311 = vmatpush3.bf16.msra.mxu1 %v289_v13  ;;  %s96_s10 = scalar_lea.vmem [#allocation13], %s92_s30 }
  0x48   : > { %v97_v14 = vld [vmem:[%s96_s10] sm:$0x1]  ;;  %s98_s11 = scalar_lea.vmem [#allocation13], %s93_s9 }
  0x49   : > { %v100_v15 = vpack.c.bf16 %v97_v14, %v97_v14  ;;  %v99_v16 = vld [vmem:[%s98_s11] sm:$0x1]  ;;  %s94_s1 = scalar_lea.vmem %s609_s5, %s91_s13 }
  0x4a   : > { %v101_v17 = vpack.c.bf16 %v99_v16, %v99_v16  ;;  %229 = vrot.lane.b32.xlu0 %v99_v16, %s482_s12  ;;  %v95_v18 = vld [vmem:[%s94_s1] sm:$0x1] }
  0x4b   : > { %305 = vmatmul.mubr.msk.bf16.vlgmr.msra.gmra.mxu0 %vm114_vm2, %v100_v15 }
  0x4c   : > { %313 = vmatmul.mubr.msk.bf16.vlgmr.msra.gmra.mxu1 %vm114_vm2, %v101_v17 }
  0xbc   : > { %v230_v33 = vpop.permute.xlu0 %229 }
 0x10b   : > { %v152_v19 = vpop.f32.mrf.mxu0 }
 0x10c   : > { %v158_v20 = vadd.f32 %v152_v19, %v95_v18  ;;  %v208_v21 = vpop.f32.mrf.mxu1 }
 0x10d   : > { %v306_v22 = vpop.f32.mrf.mxu0 }
 0x10e   : > { %v214_v23 = vadd.f32 %v208_v21, %v158_v20  ;;  %v314_v24 = vpop.f32.mrf.mxu1 }
 0x10f   : > { %v155_v25 = vpop.f32.mrf.mxu0 }
 0x110   : > { %v292_v26 = vmul.f32 -1.442695, %v214_v23  ;;  %340 = vtanh.f32 %v214_v23  ;;  %v211_v27 = vpop.f32.mrf.mxu1 }
 0x111   : > { %v307_v28 = vpop.f32.mrf.mxu0 }
 0x112   : > { %342 = vpow2.f32 %v292_v26  ;;  %v315_v29 = vpop.f32.mrf.mxu1 }
 0x11d   : > { %v341_v30 = vpop.eup %340 }
 0x11e   : > { %224 = vrot.lane.b32.xlu0 %v341_v30, %s482_s12 }
 0x11f   : > { %v343_v31 = vpop.eup %342 }
 0x120   : > { %v219_v32 = vadd.f32 1.0, %v343_v31 }
 0x122   : > { %344 = vrcp.f32 %v219_v32 }
 0x12f   : > { %v345_v34 = vpop.eup %344 }
 0x130   : > { %v232_v35 = vmul.f32 %v345_v34, %v230_v33 }
 0x132   : > { %234 = vrot.lane.b32.xlu1 %v232_v35, %s483_s16 }
 0x190   : > { %v225_v36 = vpop.permute.xlu0 %224 }
 0x191   : > { %v227_v37 = vmul.f32 %v345_v34, %v225_v36 }
 0x1a4   : > { %v235_v38 = vpop.permute.xlu1 %234 }
 0x1a5   : > { %v237_v39 = vadd.f32 %v235_v38, %v227_v37 }
 0x1a7   : > { %346 = vtanh.f32 %v237_v39 }
 0x1b4   : > { %v347_v40 = vpop.eup %346 }
 0x1b5   : > { %240 = vrot.lane.b32.xlu1 %v347_v40, %s482_s12 }
 0x1b9   : > { %249 = vrot.lane.b32.xlu1 %v237_v39, %s482_s12 }
 0x227   : > { %v241_v41 = vpop.permute.xlu1 %240 }
 0x228   : > { %v243_v42 = vmul.f32 %v345_v34, %v241_v41 }
 0x22a   : > { %245 = vrot.lane.b32.xlu0 %v243_v42, %s484_s17 }
 0x22b   : > { %v250_v43 = vpop.permute.xlu1 %249 }
 0x29a   :  { %90 = sbr.rel (!%p87_p7) target bundleno = 65 (0x41), region = 59 }
 0x29c   : > { %v246_v44 = vpop.permute.xlu0 %245 }
 0x29d   : > { %v252_v45 = vsel %vm114_vm2, %v246_v44, %v250_v43 }
 0x29e   : > { %293 = vst.msk [vmem:[%s278_s2 + $0x3] sm:$0x1] %vm255_vm3, %v252_v45 }
 0x29f PF:  { %s485_s3 = smov [#allocation13]  }
 0x2a0   :  { %s262_s20 = sshll.u32 %s485_s3, 4  ;;  %s263_s20 = int_to_ptr.vmem [resolvable:$true] %s262_s20 }
 0x2a1   :  { %s436_s21 = scalar_lea.vmem %s263_s20, 384  ;;  %p441_p9 = scmp.lt.s32.totalorder %s263_s20, %s263_s20 }
 0x2a2   :  { %p437_p8 = scmp.ne.s32.totalorder %s263_s20, %s436_s21  ;;  %p442_p10 = scmp.lt.s32.totalorder %s436_s21, %s436_s21 }
 0x2a4   :  { %p443_p11 = por %p442_p10, %p441_p9 }
 0x2a6   :  { %p444_p12 = pnand %p443_p11, %p437_p8 }
 0x2a8   :  { %447 = shalt.err (!%p444_p12)
}
 0x2a9   :  { %s486_s22 = smov 128   ;;  %s487_s23 = smov 8  }
 0x2aa   :  { %268 = dma.vmem_to_hbm [thread:$0]  %s263_s20, 384, %s612_s8, [#allocation9], %s486_s22, %s486_s22, %s487_s23  }
 0x2ab   :  { %466 = dma.done.wait [#allocation9], 384  }
 0x2ac   :  { %467 = vsyncadd [#allocation9], 4294966912 }
 0x2ad   :  { %272 = vsyncpa [#allocation8], 1 }
 0x2ae   :  { %273 = vsyncpa [#allocation11], 1 }
 0x2af   :  { %274 = vsyncpa [#allocation9], 1 }

</bundles_post_ra>
